<compile_context>
chip_gen: v6e
topology: v6e:2x2x1
jax: 0.10.0
libtpu: 0.0.40
codegen_flags: <defaults>
</compile_context>

<pallas_src>
import math
from functools import partial

import jax
import jax.numpy as jnp
from jax.experimental import pallas as pl
from jax.experimental.pallas import tpu as pltpu

_VMEM_LIMIT = 64 * 1024 * 1024  # fits v7x's 64 MiB VMEM; well below v5e/v6e 128 MiB


# ---------------------------------------------------------------------------
# Fused Q/K/V projection:  out[p] = x[p] @ W[p] + b[p]   for p in {q, k, v}
# ---------------------------------------------------------------------------
def _qkv_proj_kernel(x_ref, w_ref, b_ref, o_ref):
    # x_ref: (tm, H)   w_ref: (H, H)   b_ref: (1, H)   o_ref: (tm, H)
    acc = jnp.dot(x_ref[...].astype(jnp.bfloat16),
                  w_ref[...].astype(jnp.bfloat16),
                  preferred_element_type=jnp.float32)
    o_ref[...] = (acc + b_ref[...].astype(jnp.float32)).astype(o_ref.dtype)


def _qkv_projection(x_all, w_all, b_all, *, out_dtype, tm=256):
    """x_all: (3, R, H), w_all: (3, H, H), b_all: (3, 1, H) -> (3, R, H)."""
    _, rows, h = x_all.shape
    tm = min(tm, rows)
    rows_pad = pl.cdiv(rows, tm) * tm
    if rows_pad != rows:
        x_all = jnp.pad(x_all, ((0, 0), (0, rows_pad - rows), (0, 0)))

    out = pl.pallas_call(
        _qkv_proj_kernel,
        out_shape=jax.ShapeDtypeStruct((3, rows_pad, h), out_dtype),
        grid=(3, rows_pad // tm),
        in_specs=[
            pl.BlockSpec((None, tm, h), lambda p, i: (p, i, 0)),   # activation row tile
            pl.BlockSpec((None, h, h), lambda p, i: (p, 0, 0)),    # weight p, resident over rows
            pl.BlockSpec((None, 1, h), lambda p, i: (p, 0, 0)),    # bias p, resident over rows
        ],
        out_specs=pl.BlockSpec((None, tm, h), lambda p, i: (p, i, 0)),
        compiler_params=pltpu.CompilerParams(
            dimension_semantics=("arbitrary", "parallel"),
            vmem_limit_bytes=_VMEM_LIMIT),
    )(x_all, w_all, b_all)
    return out[:, :rows, :]


# ---------------------------------------------------------------------------
# Attention core + fused output projection (per batch, per query tile)
# ---------------------------------------------------------------------------
def _make_attn_out_kernel(n_heads, d_k):
    sm_scale = 1.0 / math.sqrt(d_k)

    def kernel(q_ref, k_ref, v_ref, m_ref, wo_ref, bo_ref, o_ref):
        # q_ref: (tq, U) bf16   k_ref/v_ref: (S, U) bf16   m_ref: (tq, S) f32
        # wo_ref: (U, U) f32    bo_ref: (1, U) f32         o_ref: (tq, U) f32
        q = q_ref[...]
        k = k_ref[...]
        v = v_ref[...]
        mask = m_ref[...]
        neg = -1e9 * (1.0 - mask)

        tq = q.shape[0]
        n_units = wo_ref.shape[1]
        acc = jnp.zeros((tq, n_units), jnp.float32)

        for h in range(n_heads):                      # static unroll, nH small
            lo = h * d_k
            hi = lo + d_k
            q_h = q[:, lo:hi]                         # (tq, d_k)
            k_h = k[:, lo:hi]                         # (S,  d_k)
            v_h = v[:, lo:hi]                         # (S,  d_k)

            # scores = (q_h @ k_h^T) / sqrt(d_k) -- bf16 MXU, f32 accumulation
            s = jax.lax.dot_general(
                q_h, k_h,
                dimension_numbers=(((1,), (1,)), ((), ())),
                preferred_element_type=jnp.float32) * sm_scale

            # masking exactly as in the PyTorch module: x * mask - 1e9 * (1 - mask)
            s = s * mask + neg

            # numerically-stable softmax; denominator inverse goes to the EUP
            s_max = jnp.max(s, axis=-1, keepdims=True)
            p = jnp.exp(s - s_max)
            denom = jnp.sum(p, axis=-1, keepdims=True)
            att = p * pl.reciprocal(denom, approx=True)
            # TODO(synk): training-mode dropout on `att` (scaled Bernoulli mask)
            # not implemented; kernel matches model.eval() behavior.

            ctx = jnp.dot(att.astype(jnp.bfloat16), v_h,
                          preferred_element_type=jnp.float32)      # (tq, d_k)

            # fused output projection: H @ Wo == sum_h ctx_h @ Wo[h*d_k:(h+1)*d_k]
            wo_h = wo_ref[lo:hi, :]                                 # (d_k, U)
            acc = acc + jnp.dot(ctx.astype(jnp.bfloat16),
                                wo_h.astype(jnp.bfloat16),
                                preferred_element_type=jnp.float32)

        o_ref[...] = (acc + bo_ref[...].astype(jnp.float32)).astype(o_ref.dtype)

    return kernel


# ---------------------------------------------------------------------------
# Full MultiHeadedAttention forward
# ---------------------------------------------------------------------------
def multi_headed_attention(query, key, value, mask, params, n_heads):
    """query/key/value: (B, S, n_units), mask: (B, S, S) of {0,1}."""
    B, S, n_units = query.shape
    d_k = n_units // n_heads
    wq, bq, wk, bk, wv, bv, wo, bo = params

    # one fused pallas_call for the three input projections
    x_all = jnp.stack([query.reshape(B * S, n_units),
                       key.reshape(B * S, n_units),
                       value.reshape(B * S, n_units)])
    w_all = jnp.stack([wq, wk, wv])
    b_all = jnp.stack([bq, bk, bv]).reshape(3, 1, n_units)
    qkv = _qkv_projection(x_all, w_all, b_all, out_dtype=jnp.bfloat16)
    q_proj = qkv[0].reshape(B, S, n_units)
    k_proj = qkv[1].reshape(B, S, n_units)
    v_proj = qkv[2].reshape(B, S, n_units)

    tq = min(128, S)
    if S % tq:
        tq = S  # fall back to one query tile per batch element

    kernel = _make_attn_out_kernel(n_heads, d_k)
    out = pl.pallas_call(
        kernel,
        out_shape=jax.ShapeDtypeStruct((B, S, n_units), query.dtype),
        grid=(B, S // tq),
        in_specs=[
            pl.BlockSpec((None, tq, n_units), lambda b, qi: (b, qi, 0)),  # q tile
            pl.BlockSpec((None, S, n_units), lambda b, qi: (b, 0, 0)),    # full K rows
            pl.BlockSpec((None, S, n_units), lambda b, qi: (b, 0, 0)),    # full V rows
            pl.BlockSpec((None, tq, S), lambda b, qi: (b, qi, 0)),        # mask tile
            pl.BlockSpec((n_units, n_units), lambda b, qi: (0, 0)),       # Wo, resident
            pl.BlockSpec((1, n_units), lambda b, qi: (0, 0)),             # bo, resident
        ],
        out_specs=pl.BlockSpec((None, tq, n_units), lambda b, qi: (b, qi, 0)),
        compiler_params=pltpu.CompilerParams(
            dimension_semantics=("parallel", "parallel"),
            vmem_limit_bytes=_VMEM_LIMIT),
    )(q_proj, k_proj, v_proj, mask.astype(jnp.float32), wo,
      bo.reshape(1, n_units))
    return out


# ---------------------------------------------------------------------------
# Pure-JAX reference mirroring the PyTorch forward (eval mode)
# ---------------------------------------------------------------------------
def _reference(query, key, value, mask, params, n_heads):
    B, S, n_units = query.shape
    d_k = n_units // n_heads
    wq, bq, wk, bk, wv, bv, wo, bo = params

    def proj(x, w, b):
        y = x.reshape(B * S, n_units) @ w + b
        return y.reshape(B, S, n_heads, d_k).transpose(0, 2, 1, 3)

    q = proj(query, wq, bq)
    k = proj(key, wk, bk)
    v = proj(value, wv, bv)
    x = jnp.einsum('bhqd,bhkd->bhqk', q, k) / math.sqrt(d_k)
    m = mask.astype(jnp.float32)[:, None, :, :]
    x_tilde = x * m - 1e9 * (1.0 - m)
    att = jax.nn.softmax(x_tilde, axis=-1)           # dropout = identity (eval)
    h = jnp.einsum('bhqk,bhkd->bhqd', att, v)
    h = h.transpose(0, 2, 1, 3).reshape(B, S, n_units)
    return h @ wo + bo


if __name__ == "__main__":
    root = jax.random.PRNGKey(0)
    B, S, n_heads, n_units = 2, 8, 4, 128   # d_k = 32 (lane-friendly n_units)

    ks = jax.random.split(root, 11)
    query = jax.random.normal(ks[0], (B, S, n_units), jnp.float32)
    key_in = jax.random.normal(ks[1], (B, S, n_units), jnp.float32)
    value = jax.random.normal(ks[2], (B, S, n_units), jnp.float32)

    wscale = 1.0 / math.sqrt(n_units)
    wq = jax.random.normal(ks[3], (n_units, n_units), jnp.float32) * wscale
    wk = jax.random.normal(ks[4], (n_units, n_units), jnp.float32) * wscale
    wv = jax.random.normal(ks[5], (n_units, n_units), jnp.float32) * wscale
    wo = jax.random.normal(ks[6], (n_units, n_units), jnp.float32) * wscale
    bq = jax.random.normal(ks[7], (n_units,), jnp.float32) * 0.01
    bk = jax.random.normal(ks[8], (n_units,), jnp.float32) * 0.01
    bv = jax.random.normal(ks[9], (n_units,), jnp.float32) * 0.01
    bo = jax.random.normal(ks[10], (n_units,), jnp.float32) * 0.01
    params = (wq, bq, wk, bk, wv, bv, wo, bo)

    # causal (subsequent) mask, one per batch element: (B, S, S) of {0, 1}
    mask = jnp.broadcast_to(jnp.tril(jnp.ones((S, S), jnp.float32)), (B, S, S))

    mha = jax.jit(partial(multi_headed_attention, n_heads=n_heads))
    out = mha(query, key_in, value, mask, params)
    out = jax.block_until_ready(out)

    ref = _reference(query, key_in, value, mask, params, n_heads)
    assert out.shape == (B, S, n_units)
    # tolerance accounts for bf16 MXU operands (f32 accumulation) in the kernel
    assert jnp.allclose(out, ref, atol=5e-2, rtol=5e-2), "mismatch vs reference"

    print("KERNEL_OK")
</pallas_src>

<mosaic_0001>
module attributes {stable_mosaic.version = 11 : i64} {
  func.func @_qkv_proj_kernel(%arg0: i32, %arg1: i32, %arg2: memref<1x16x128xf32, #tpu.memory_space<vmem>>, %arg3: memref<1x128x128xf32, #tpu.memory_space<vmem>>, %arg4: memref<1x1x128xf32, #tpu.memory_space<vmem>>, %arg5: memref<1x16x128xbf16, #tpu.memory_space<vmem>>) attributes {dimension_semantics = [#tpu.dimension_semantics<arbitrary>, #tpu.dimension_semantics<parallel>], iteration_bounds = array<i64: 3, 1>, scalar_prefetch = 0 : i64, scratch_operands = 0 : i64, tpu.core_type = #tpu.core_type<tc>, window_params = [{transform_indices = @transform_0, window_bounds = array<i64: 1, 16, 128>}, {transform_indices = @transform_1, window_bounds = array<i64: 1, 128, 128>}, {transform_indices = @transform_2, window_bounds = array<i64: 1, 1, 128>}, {transform_indices = @transform_3, window_bounds = array<i64: 1, 16, 128>}]} {
    %c0 = arith.constant 0 : index
    %c0_0 = arith.constant 0 : index
    %c0_1 = arith.constant 0 : index
    %0 = vector.load %arg2[%c0, %c0_0, %c0_1] : memref<1x16x128xf32, #tpu.memory_space<vmem>>, vector<1x16x128xf32>
    %1 = vector.shape_cast %0 : vector<1x16x128xf32> to vector<16x128xf32>
    %2 = arith.truncf %1 : vector<16x128xf32> to vector<16x128xbf16>
    %c0_2 = arith.constant 0 : index
    %c0_3 = arith.constant 0 : index
    %c0_4 = arith.constant 0 : index
    %3 = vector.load %arg3[%c0_2, %c0_3, %c0_4] : memref<1x128x128xf32, #tpu.memory_space<vmem>>, vector<1x128x128xf32>
    %4 = vector.shape_cast %3 : vector<1x128x128xf32> to vector<128x128xf32>
    %5 = arith.truncf %4 : vector<128x128xf32> to vector<128x128xbf16>
    %cst = arith.constant dense<0.000000e+00> : vector<16x128xf32>
    %6 = tpu.matmul %2, %5, %cst {dimension_numbers = #tpu.dot_dimension_numbers<[1], [0], [0], [1], [0, 0, 1, 1], [], []>} : vector<16x128xbf16>, vector<128x128xbf16>, vector<16x128xf32> -> vector<16x128xf32>
    %c0_5 = arith.constant 0 : index
    %c0_6 = arith.constant 0 : index
    %c0_7 = arith.constant 0 : index
    %7 = vector.load %arg4[%c0_5, %c0_6, %c0_7] : memref<1x1x128xf32, #tpu.memory_space<vmem>>, vector<1x1x128xf32>
    %8 = vector.shape_cast %7 : vector<1x1x128xf32> to vector<1x128xf32>
    %9 = vector.broadcast %8 : vector<1x128xf32> to vector<16x128xf32>
    %10 = arith.addf %6, %9 : vector<16x128xf32>
    %11 = arith.truncf %10 : vector<16x128xf32> to vector<16x128xbf16>
    %c0_8 = arith.constant 0 : index
    %c0_9 = arith.constant 0 : index
    %c0_10 = arith.constant 0 : index
    %12 = vector.load %arg5[%c0_8, %c0_9, %c0_10] : memref<1x16x128xbf16, #tpu.memory_space<vmem>>, vector<1x16x128xbf16>
    %13 = vector.shape_cast %12 : vector<1x16x128xbf16> to vector<16x128xbf16>
    %14 = vector.shape_cast %11 : vector<16x128xbf16> to vector<1x16x128xbf16>
    tpu.vector_store %arg5[%c0_8, %c0_9, %c0_10], %14 {strides = array<i32>} : memref<1x16x128xbf16, #tpu.memory_space<vmem>>, vector<1x16x128xbf16>,
    return
  }
  func.func @transform_0(%arg0: i32, %arg1: i32) -> (i32, i32, i32) {
    %c0_i32 = arith.constant 0 : i32
    %c0_i32_0 = arith.constant 0 : i32
    return %arg0, %arg1, %c0_i32 : i32, i32, i32
  }
  func.func @transform_1(%arg0: i32, %arg1: i32) -> (i32, i32, i32) {
    %c0_i32 = arith.constant 0 : i32
    %c0_i32_0 = arith.constant 0 : i32
    %c0_i32_1 = arith.constant 0 : i32
    return %arg0, %c0_i32, %c0_i32_0 : i32, i32, i32
  }
  func.func @transform_2(%arg0: i32, %arg1: i32) -> (i32, i32, i32) {
    %c0_i32 = arith.constant 0 : i32
    %c0_i32_0 = arith.constant 0 : i32
    %c0_i32_1 = arith.constant 0 : i32
    return %arg0, %c0_i32, %c0_i32_0 : i32, i32, i32
  }
  func.func @transform_3(%arg0: i32, %arg1: i32) -> (i32, i32, i32) {
    %c0_i32 = arith.constant 0 : i32
    %c0_i32_0 = arith.constant 0 : i32
    return %arg0, %arg1, %c0_i32 : i32, i32, i32
  }
}

module attributes {stable_mosaic.version = 11 : i64} {
  func.func @kernel(%arg0: i32, %arg1: i32, %arg2: memref<1x8x128xbf16, #tpu.memory_space<vmem>>, %arg3: memref<1x8x128xbf16, #tpu.memory_space<vmem>>, %arg4: memref<1x8x128xbf16, #tpu.memory_space<vmem>>, %arg5: memref<1x8x8xf32, #tpu.memory_space<vmem>>, %arg6: memref<128x128xf32, #tpu.memory_space<vmem>>, %arg7: memref<1x128xf32, #tpu.memory_space<vmem>>, %arg8: memref<1x8x128xf32, #tpu.memory_space<vmem>>) attributes {dimension_semantics = [#tpu.dimension_semantics<parallel>, #tpu.dimension_semantics<parallel>], iteration_bounds = array<i64: 2, 1>, scalar_prefetch = 0 : i64, scratch_operands = 0 : i64, tpu.core_type = #tpu.core_type<tc>, window_params = [{transform_indices = @transform_0, window_bounds = array<i64: 1, 8, 128>}, {transform_indices = @transform_1, window_bounds = array<i64: 1, 8, 128>}, {transform_indices = @transform_2, window_bounds = array<i64: 1, 8, 128>}, {transform_indices = @transform_3, window_bounds = array<i64: 1, 8, 8>}, {pipeline_mode = #tpu.pipeline_mode<synchronous>, transform_indices = @transform_4, window_bounds = array<i64: 128, 128>}, {pipeline_mode = #tpu.pipeline_mode<synchronous>, transform_indices = @transform_5, window_bounds = array<i64: 1, 128>}, {transform_indices = @transform_6, window_bounds = array<i64: 1, 8, 128>}]} {
    %c0 = arith.constant 0 : index
    %c0_0 = arith.constant 0 : index
    %c0_1 = arith.constant 0 : index
    %0 = vector.load %arg2[%c0, %c0_0, %c0_1] : memref<1x8x128xbf16, #tpu.memory_space<vmem>>, vector<1x8x128xbf16>
    %1 = vector.shape_cast %0 : vector<1x8x128xbf16> to vector<8x128xbf16>
    %c0_2 = arith.constant 0 : index
    %c0_3 = arith.constant 0 : index
    %c0_4 = arith.constant 0 : index
    %2 = vector.load %arg3[%c0_2, %c0_3, %c0_4] : memref<1x8x128xbf16, #tpu.memory_space<vmem>>, vector<1x8x128xbf16>
    %3 = vector.shape_cast %2 : vector<1x8x128xbf16> to vector<8x128xbf16>
    %c0_5 = arith.constant 0 : index
    %c0_6 = arith.constant 0 : index
    %c0_7 = arith.constant 0 : index
    %4 = vector.load %arg4[%c0_5, %c0_6, %c0_7] : memref<1x8x128xbf16, #tpu.memory_space<vmem>>, vector<1x8x128xbf16>
    %5 = vector.shape_cast %4 : vector<1x8x128xbf16> to vector<8x128xbf16>
    %c0_8 = arith.constant 0 : index
    %c0_9 = arith.constant 0 : index
    %c0_10 = arith.constant 0 : index
    %6 = vector.load %arg5[%c0_8, %c0_9, %c0_10] : memref<1x8x8xf32, #tpu.memory_space<vmem>>, vector<1x8x8xf32>
    %7 = vector.shape_cast %6 : vector<1x8x8xf32> to vector<8x8xf32>
    %cst = arith.constant 1.000000e+00 : f32
    %8 = vector.broadcast %cst : f32 to vector<8x8xf32>
    %9 = arith.subf %8, %7 : vector<8x8xf32>
    %cst_11 = arith.constant -1.000000e+09 : f32
    %10 = vector.broadcast %cst_11 : f32 to vector<8x8xf32>
    %11 = arith.mulf %10, %9 : vector<8x8xf32>
    %cst_12 = arith.constant 0.000000e+00 : f32
    %12 = vector.broadcast %cst_12 : f32 to vector<8x128xf32>
    %13 = vector.extract_strided_slice %1 {offsets = [0, 0], sizes = [8, 32], strides = [1, 1]} : vector<8x128xbf16> to vector<8x32xbf16>
    %14 = vector.extract_strided_slice %3 {offsets = [0, 0], sizes = [8, 32], strides = [1, 1]} : vector<8x128xbf16> to vector<8x32xbf16>
    %15 = vector.extract_strided_slice %5 {offsets = [0, 0], sizes = [8, 32], strides = [1, 1]} : vector<8x128xbf16> to vector<8x32xbf16>
    %cst_13 = arith.constant dense<0.000000e+00> : vector<8x8xf32>
    %16 = tpu.matmul %13, %14, %cst_13 {dimension_numbers = #tpu.dot_dimension_numbers<[1], [1], [0], [0], [0, 0, 1, 0], [], []>} : vector<8x32xbf16>, vector<8x32xbf16>, vector<8x8xf32> -> vector<8x8xf32>
    %cst_14 = arith.constant 0.176776692 : f32
    %17 = vector.broadcast %cst_14 : f32 to vector<8x8xf32>
    %18 = arith.mulf %16, %17 : vector<8x8xf32>
    %19 = arith.mulf %18, %7 : vector<8x8xf32>
    %20 = arith.addf %19, %11 : vector<8x8xf32>
    %cst_15 = arith.constant dense<0xFF800000> : vector<8xf32>
    %21 = vector.multi_reduction <maximumf>, %20, %cst_15 [1] : vector<8x8xf32> to vector<8xf32>
    %22 = vector.shape_cast %21 : vector<8xf32> to vector<8x1xf32>
    %23 = vector.broadcast %22 : vector<8x1xf32> to vector<8x8xf32>
    %24 = arith.subf %20, %23 : vector<8x8xf32>
    %25 = math.exp %24 : vector<8x8xf32>
    %cst_16 = arith.constant dense<0.000000e+00> : vector<8xf32>
    %26 = vector.multi_reduction <add>, %25, %cst_16 [1] : vector<8x8xf32> to vector<8xf32>
    %27 = vector.shape_cast %26 : vector<8xf32> to vector<8x1xf32>
    %28 = tpu.reciprocal %27 {approx = true} : vector<8x1xf32> -> vector<8x1xf32>
    %29 = vector.broadcast %28 : vector<8x1xf32> to vector<8x8xf32>
    %30 = arith.mulf %25, %29 : vector<8x8xf32>
    %31 = arith.truncf %30 : vector<8x8xf32> to vector<8x8xbf16>
    %cst_17 = arith.constant dense<0.000000e+00> : vector<8x32xf32>
    %32 = tpu.matmul %31, %15, %cst_17 {dimension_numbers = #tpu.dot_dimension_numbers<[1], [0], [0], [1], [0, 0, 1, 1], [], []>} : vector<8x8xbf16>, vector<8x32xbf16>, vector<8x32xf32> -> vector<8x32xf32>
    %c0_18 = arith.constant 0 : index
    %c0_19 = arith.constant 0 : index
    %33 = vector.load %arg6[%c0_18, %c0_19] : memref<128x128xf32, #tpu.memory_space<vmem>>, vector<32x128xf32>
    %34 = arith.truncf %32 : vector<8x32xf32> to vector<8x32xbf16>
    %35 = arith.truncf %33 : vector<32x128xf32> to vector<32x128xbf16>
    %cst_20 = arith.constant dense<0.000000e+00> : vector<8x128xf32>
    %36 = tpu.matmul %34, %35, %cst_20 {dimension_numbers = #tpu.dot_dimension_numbers<[1], [0], [0], [1], [0, 0, 1, 1], [], []>} : vector<8x32xbf16>, vector<32x128xbf16>, vector<8x128xf32> -> vector<8x128xf32>
    %37 = arith.addf %12, %36 : vector<8x128xf32>
    %38 = vector.extract_strided_slice %1 {offsets = [0, 32], sizes = [8, 32], strides = [1, 1]} : vector<8x128xbf16> to vector<8x32xbf16>
    %39 = vector.extract_strided_slice %3 {offsets = [0, 32], sizes = [8, 32], strides = [1, 1]} : vector<8x128xbf16> to vector<8x32xbf16>
    %40 = vector.extract_strided_slice %5 {offsets = [0, 32], sizes = [8, 32], strides = [1, 1]} : vector<8x128xbf16> to vector<8x32xbf16>
    %cst_21 = arith.constant dense<0.000000e+00> : vector<8x8xf32>
    %41 = tpu.matmul %38, %39, %cst_21 {dimension_numbers = #tpu.dot_dimension_numbers<[1], [1], [0], [0], [0, 0, 1, 0], [], []>} : vector<8x32xbf16>, vector<8x32xbf16>, vector<8x8xf32> -> vector<8x8xf32>
    %cst_22 = arith.constant 0.176776692 : f32
    %42 = vector.broadcast %cst_22 : f32 to vector<8x8xf32>
    %43 = arith.mulf %41, %42 : vector<8x8xf32>
    %44 = arith.mulf %43, %7 : vector<8x8xf32>
    %45 = arith.addf %44, %11 : vector<8x8xf32>
    %cst_23 = arith.constant dense<0xFF800000> : vector<8xf32>
    %46 = vector.multi_reduction <maximumf>, %45, %cst_23 [1] : vector<8x8xf32> to vector<8xf32>
    %47 = vector.shape_cast %46 : vector<8xf32> to vector<8x1xf32>
    %48 = vector.broadcast %47 : vector<8x1xf32> to vector<8x8xf32>
    %49 = arith.subf %45, %48 : vector<8x8xf32>
    %50 = math.exp %49 : vector<8x8xf32>
    %cst_24 = arith.constant dense<0.000000e+00> : vector<8xf32>
    %51 = vector.multi_reduction <add>, %50, %cst_24 [1] : vector<8x8xf32> to vector<8xf32>
    %52 = vector.shape_cast %51 : vector<8xf32> to vector<8x1xf32>
    %53 = tpu.reciprocal %52 {approx = true} : vector<8x1xf32> -> vector<8x1xf32>
    %54 = vector.broadcast %53 : vector<8x1xf32> to vector<8x8xf32>
    %55 = arith.mulf %50, %54 : vector<8x8xf32>
    %56 = arith.truncf %55 : vector<8x8xf32> to vector<8x8xbf16>
    %cst_25 = arith.constant dense<0.000000e+00> : vector<8x32xf32>
    %57 = tpu.matmul %56, %40, %cst_25 {dimension_numbers = #tpu.dot_dimension_numbers<[1], [0], [0], [1], [0, 0, 1, 1], [], []>} : vector<8x8xbf16>, vector<8x32xbf16>, vector<8x32xf32> -> vector<8x32xf32>
    %c32 = arith.constant 32 : index
    %c0_26 = arith.constant 0 : index
    %58 = vector.load %arg6[%c32, %c0_26] : memref<128x128xf32, #tpu.memory_space<vmem>>, vector<32x128xf32>
    %59 = arith.truncf %57 : vector<8x32xf32> to vector<8x32xbf16>
    %60 = arith.truncf %58 : vector<32x128xf32> to vector<32x128xbf16>
    %cst_27 = arith.constant dense<0.000000e+00> : vector<8x128xf32>
    %61 = tpu.matmul %59, %60, %cst_27 {dimension_numbers = #tpu.dot_dimension_numbers<[1], [0], [0], [1], [0, 0, 1, 1], [], []>} : vector<8x32xbf16>, vector<32x128xbf16>, vector<8x128xf32> -> vector<8x128xf32>
    %62 = arith.addf %37, %61 : vector<8x128xf32>
    %63 = vector.extract_strided_slice %1 {offsets = [0, 64], sizes = [8, 32], strides = [1, 1]} : vector<8x128xbf16> to vector<8x32xbf16>
    %64 = vector.extract_strided_slice %3 {offsets = [0, 64], sizes = [8, 32], strides = [1, 1]} : vector<8x128xbf16> to vector<8x32xbf16>
    %65 = vector.extract_strided_slice %5 {offsets = [0, 64], sizes = [8, 32], strides = [1, 1]} : vector<8x128xbf16> to vector<8x32xbf16>
    %cst_28 = arith.constant dense<0.000000e+00> : vector<8x8xf32>
    %66 = tpu.matmul %63, %64, %cst_28 {dimension_numbers = #tpu.dot_dimension_numbers<[1], [1], [0], [0], [0, 0, 1, 0], [], []>} : vector<8x32xbf16>, vector<8x32xbf16>, vector<8x8xf32> -> vector<8x8xf32>
    %cst_29 = arith.constant 0.176776692 : f32
    %67 = vector.broadcast %cst_29 : f32 to vector<8x8xf32>
    %68 = arith.mulf %66, %67 : vector<8x8xf32>
    %69 = arith.mulf %68, %7 : vector<8x8xf32>
    %70 = arith.addf %69, %11 : vector<8x8xf32>
    %cst_30 = arith.constant dense<0xFF800000> : vector<8xf32>
    %71 = vector.multi_reduction <maximumf>, %70, %cst_30 [1] : vector<8x8xf32> to vector<8xf32>
    %72 = vector.shape_cast %71 : vector<8xf32> to vector<8x1xf32>
    %73 = vector.broadcast %72 : vector<8x1xf32> to vector<8x8xf32>
    %74 = arith.subf %70, %73 : vector<8x8xf32>
    %75 = math.exp %74 : vector<8x8xf32>
    %cst_31 = arith.constant dense<0.000000e+00> : vector<8xf32>
    %76 = vector.multi_reduction <add>, %75, %cst_31 [1] : vector<8x8xf32> to vector<8xf32>
    %77 = vector.shape_cast %76 : vector<8xf32> to vector<8x1xf32>
    %78 = tpu.reciprocal %77 {approx = true} : vector<8x1xf32> -> vector<8x1xf32>
    %79 = vector.broadcast %78 : vector<8x1xf32> to vector<8x8xf32>
    %80 = arith.mulf %75, %79 : vector<8x8xf32>
    %81 = arith.truncf %80 : vector<8x8xf32> to vector<8x8xbf16>
    %cst_32 = arith.constant dense<0.000000e+00> : vector<8x32xf32>
    %82 = tpu.matmul %81, %65, %cst_32 {dimension_numbers = #tpu.dot_dimension_numbers<[1], [0], [0], [1], [0, 0, 1, 1], [], []>} : vector<8x8xbf16>, vector<8x32xbf16>, vector<8x32xf32> -> vector<8x32xf32>
    %c64 = arith.constant 64 : index
    %c0_33 = arith.constant 0 : index
    %83 = vector.load %arg6[%c64, %c0_33] : memref<128x128xf32, #tpu.memory_space<vmem>>, vector<32x128xf32>
    %84 = arith.truncf %82 : vector<8x32xf32> to vector<8x32xbf16>
    %85 = arith.truncf %83 : vector<32x128xf32> to vector<32x128xbf16>
    %cst_34 = arith.constant dense<0.000000e+00> : vector<8x128xf32>
    %86 = tpu.matmul %84, %85, %cst_34 {dimension_numbers = #tpu.dot_dimension_numbers<[1], [0], [0], [1], [0, 0, 1, 1], [], []>} : vector<8x32xbf16>, vector<32x128xbf16>, vector<8x128xf32> -> vector<8x128xf32>
    %87 = arith.addf %62, %86 : vector<8x128xf32>
    %88 = vector.extract_strided_slice %1 {offsets = [0, 96], sizes = [8, 32], strides = [1, 1]} : vector<8x128xbf16> to vector<8x32xbf16>
    %89 = vector.extract_strided_slice %3 {offsets = [0, 96], sizes = [8, 32], strides = [1, 1]} : vector<8x128xbf16> to vector<8x32xbf16>
    %90 = vector.extract_strided_slice %5 {offsets = [0, 96], sizes = [8, 32], strides = [1, 1]} : vector<8x128xbf16> to vector<8x32xbf16>
    %cst_35 = arith.constant dense<0.000000e+00> : vector<8x8xf32>
    %91 = tpu.matmul %88, %89, %cst_35 {dimension_numbers = #tpu.dot_dimension_numbers<[1], [1], [0], [0], [0, 0, 1, 0], [], []>} : vector<8x32xbf16>, vector<8x32xbf16>, vector<8x8xf32> -> vector<8x8xf32>
    %cst_36 = arith.constant 0.176776692 : f32
    %92 = vector.broadcast %cst_36 : f32 to vector<8x8xf32>
    %93 = arith.mulf %91, %92 : vector<8x8xf32>
    %94 = arith.mulf %93, %7 : vector<8x8xf32>
    %95 = arith.addf %94, %11 : vector<8x8xf32>
    %cst_37 = arith.constant dense<0xFF800000> : vector<8xf32>
    %96 = vector.multi_reduction <maximumf>, %95, %cst_37 [1] : vector<8x8xf32> to vector<8xf32>
    %97 = vector.shape_cast %96 : vector<8xf32> to vector<8x1xf32>
    %98 = vector.broadcast %97 : vector<8x1xf32> to vector<8x8xf32>
    %99 = arith.subf %95, %98 : vector<8x8xf32>
    %100 = math.exp %99 : vector<8x8xf32>
    %cst_38 = arith.constant dense<0.000000e+00> : vector<8xf32>
    %101 = vector.multi_reduction <add>, %100, %cst_38 [1] : vector<8x8xf32> to vector<8xf32>
    %102 = vector.shape_cast %101 : vector<8xf32> to vector<8x1xf32>
    %103 = tpu.reciprocal %102 {approx = true} : vector<8x1xf32> -> vector<8x1xf32>
    %104 = vector.broadcast %103 : vector<8x1xf32> to vector<8x8xf32>
    %105 = arith.mulf %100, %104 : vector<8x8xf32>
    %106 = arith.truncf %105 : vector<8x8xf32> to vector<8x8xbf16>
    %cst_39 = arith.constant dense<0.000000e+00> : vector<8x32xf32>
    %107 = tpu.matmul %106, %90, %cst_39 {dimension_numbers = #tpu.dot_dimension_numbers<[1], [0], [0], [1], [0, 0, 1, 1], [], []>} : vector<8x8xbf16>, vector<8x32xbf16>, vector<8x32xf32> -> vector<8x32xf32>
    %c96 = arith.constant 96 : index
    %c0_40 = arith.constant 0 : index
    %108 = vector.load %arg6[%c96, %c0_40] : memref<128x128xf32, #tpu.memory_space<vmem>>, vector<32x128xf32>
    %109 = arith.truncf %107 : vector<8x32xf32> to vector<8x32xbf16>
    %110 = arith.truncf %108 : vector<32x128xf32> to vector<32x128xbf16>
    %cst_41 = arith.constant dense<0.000000e+00> : vector<8x128xf32>
    %111 = tpu.matmul %109, %110, %cst_41 {dimension_numbers = #tpu.dot_dimension_numbers<[1], [0], [0], [1], [0, 0, 1, 1], [], []>} : vector<8x32xbf16>, vector<32x128xbf16>, vector<8x128xf32> -> vector<8x128xf32>
    %112 = arith.addf %87, %111 : vector<8x128xf32>
    %c0_42 = arith.constant 0 : index
    %c0_43 = arith.constant 0 : index
    %113 = vector.load %arg7[%c0_42, %c0_43] : memref<1x128xf32, #tpu.memory_space<vmem>>, vector<1x128xf32>
    %114 = vector.broadcast %113 : vector<1x128xf32> to vector<8x128xf32>
    %115 = arith.addf %112, %114 : vector<8x128xf32>
    %c0_44 = arith.constant 0 : index
    %c0_45 = arith.constant 0 : index
    %c0_46 = arith.constant 0 : index
    %116 = vector.load %arg8[%c0_44, %c0_45, %c0_46] : memref<1x8x128xf32, #tpu.memory_space<vmem>>, vector<1x8x128xf32>
    %117 = vector.shape_cast %116 : vector<1x8x128xf32> to vector<8x128xf32>
    %118 = vector.shape_cast %115 : vector<8x128xf32> to vector<1x8x128xf32>
    tpu.vector_store %arg8[%c0_44, %c0_45, %c0_46], %118 {strides = array<i32>} : memref<1x8x128xf32, #tpu.memory_space<vmem>>, vector<1x8x128xf32>,
    return
  }
  func.func @transform_0(%arg0: i32, %arg1: i32) -> (i32, i32, i32) {
    %c0_i32 = arith.constant 0 : i32
    %c0_i32_0 = arith.constant 0 : i32
    return %arg0, %arg1, %c0_i32 : i32, i32, i32
  }
  func.func @transform_1(%arg0: i32, %arg1: i32) -> (i32, i32, i32) {
    %c0_i32 = arith.constant 0 : i32
    %c0_i32_0 = arith.constant 0 : i32
    %c0_i32_1 = arith.constant 0 : i32
    return %arg0, %c0_i32, %c0_i32_0 : i32, i32, i32
  }
  func.func @transform_2(%arg0: i32, %arg1: i32) -> (i32, i32, i32) {
    %c0_i32 = arith.constant 0 : i32
    %c0_i32_0 = arith.constant 0 : i32
    %c0_i32_1 = arith.constant 0 : i32
    return %arg0, %c0_i32, %c0_i32_0 : i32, i32, i32
  }
  func.func @transform_3(%arg0: i32, %arg1: i32) -> (i32, i32, i32) {
    %c0_i32 = arith.constant 0 : i32
    %c0_i32_0 = arith.constant 0 : i32
    return %arg0, %arg1, %c0_i32 : i32, i32, i32
  }
  func.func @transform_4(%arg0: i32, %arg1: i32) -> (i32, i32) {
    %c0_i32 = arith.constant 0 : i32
    %c0_i32_0 = arith.constant 0 : i32
    %c0_i32_1 = arith.constant 0 : i32
    return %c0_i32, %c0_i32_0 : i32, i32
  }
  func.func @transform_5(%arg0: i32, %arg1: i32) -> (i32, i32) {
    %c0_i32 = arith.constant 0 : i32
    %c0_i32_0 = arith.constant 0 : i32
    %c0_i32_1 = arith.constant 0 : i32
    return %c0_i32, %c0_i32_0 : i32, i32
  }
  func.func @transform_6(%arg0: i32, %arg1: i32) -> (i32, i32, i32) {
    %c0_i32 = arith.constant 0 : i32
    %c0_i32_0 = arith.constant 0 : i32
    return %arg0, %arg1, %c0_i32 : i32, i32, i32
  }
}

</mosaic_0001>

<bundles_post_ra>
// kernel: multi_headed_attention.2
= control target key start
LH: loop header
LB: loop body
LE: loop exit
PB: predicated region body
PF: predicated region fallthrough
CT: control target
= control target key end

     0   :  { %s565_s12 = smov 0   ;;  %s567_s13 = smov 0   ;;  %s628_s0 = inlined_call_operand.vmem [shape: f32[3,16,128], index: 0, kind: input, shape index: {}]   ;;  %s629_s1 = inlined_call_operand.vmem [shape: f32[3,128,128], index: 1, kind: input, shape index: {}]   ;;  %s630_s2 = inlined_call_operand.vmem [shape: f32[3,1,128], index: 2, kind: input, shape index: {}]   ;;  %s631_s3 = inlined_call_operand.vmem [shape: bf16[3,16,128], index: 3, kind: output, shape index: {}]  }
   0x1   :  { %s569_s14 = smov 0  }
   0x2 LB: > { %s25_s15 = sadd.s32 1, %s537_s13  ;;  %p442_p0 = scmp.ge.s32.totalorder %s541_s14, 1  ;;  %s541_s14 = sphi %s569_s14, %s13_s14   ;;  %s537_s13 = sphi %s567_s13, %s633_s13   ;;  %s533_s12 = sphi %s565_s12, %s632_s12  }
   0x3   : > { %p27_p1 = scmp.ge.s32.totalorder %s25_s15, 3  ;;  %p176_p2 = scmp.lt.s32.totalorder %s541_s14, 4 }
   0x5   : > { %s635_s15 = smov (%p27_p1, %s25_s15), 0  ;;  %p177_p3 = pnand %p442_p0, %p176_p2 }
   0x6   : > { %p217_p4 = scmp.lt.s32.totalorder (!%p177_p3), %s533_s12, 2 }
   0x7   : > { %180 = sbr.rel (%p177_p3) target bundleno = 251 (0xfb), region = 32 }
   0xc   : > { %v543_v0 = vmov 0.0   ;;  %vm544_vm0 = vmmov 0   ;;  %s637_s12 = smov (!%p217_p4, %s533_s12), 2 }
   0xd   : > { %473 = vmatprep.subr.bf16.mxu0 %v543_v0  ;;  %489 = vmatprep.mubr.msk.bf16.mxu0 %vm544_vm0, %v543_v0  ;;  %s455_s16 = sshll.u32 %s637_s12, 7  ;;  %s454_s20 = sshll.u32 %s637_s12, 4 }
   0xe   : > { %s589_s19 = scalar_lea.vmem %s629_s1, %s455_s16  ;;  %s224_s23 = scalar_lea.vmem %s628_s0, %s454_s20 }
   0xf   : > { %v262_v1 = vld [vmem:[%s589_s19 + $0x70] sm:$0xff]  ;;  %v263_v2 = vld [vmem:[%s589_s19 + $0x78] sm:$0xff]  ;;  %v260_v3 = vld [vmem:[%s589_s19 + $0x60] sm:$0xff]  ;;  %s233_s26 = scalar_lea.vmem %s630_s2, %s637_s12  ;;  %s456_s27 = sshll.u32 %s637_s12, 3 }
  0x10   : > { %v271_v4 = vpack.c.bf16 %v263_v2, %v262_v1  ;;  %v261_v5 = vld [vmem:[%s589_s19 + $0x68] sm:$0xff]  ;;  %v258_v7 = vld [vmem:[%s589_s19 + $0x50] sm:$0xff]  ;;  %v259_v8 = vld [vmem:[%s589_s19 + $0x58] sm:$0xff]  ;;  %s242_s30 = scalar_lea.vmem %s631_s3, %s456_s27 }
  0x11   : > { %v270_v6 = vpack.c.bf16 %v261_v5, %v260_v3  ;;  %v269_v9 = vpack.c.bf16 %v259_v8, %v258_v7  ;;  %v256_v10 = vld [vmem:[%s589_s19 + $0x40] sm:$0xff]  ;;  %v257_v11 = vld [vmem:[%s589_s19 + $0x48] sm:$0xff]  ;;  %v254_v13 = vld [vmem:[%s589_s19 + $0x30] sm:$0xff] }
  0x12   : > { %474 = vmatpush3.bf16.msra.mxu0 %v271_v4  ;;  %v268_v12 = vpack.c.bf16 %v257_v11, %v256_v10  ;;  %v255_v14 = vld [vmem:[%s589_s19 + $0x38] sm:$0xff]  ;;  %v252_v16 = vld [vmem:[%s589_s19 + $0x20] sm:$0xff]  ;;  %v253_v17 = vld [vmem:[%s589_s19 + $0x28] sm:$0xff] }
  0x13   : > { %475 = vmatprep.subr.bf16.mxu0 %v543_v0  ;;  %v267_v15 = vpack.c.bf16 %v255_v14, %v254_v13  ;;  %v266_v18 = vpack.c.bf16 %v253_v17, %v252_v16  ;;  %v250_v19 = vld [vmem:[%s589_s19 + $0x10] sm:$0xff]  ;;  %v251_v20 = vld [vmem:[%s589_s19 + $0x18] sm:$0xff]  ;;  %v248_v22 = vld [vmem:[%s589_s19] sm:$0xff] }
  0x14   : > { %v265_v21 = vpack.c.bf16 %v251_v20, %v250_v19  ;;  %v249_v23 = vld [vmem:[%s589_s19 + $0x8] sm:$0xff]  ;;  %v245_v25 = vld [vmem:[%s224_s23] sm:$0xff] }
  0x15   : > { %v264_v24 = vpack.c.bf16 %v249_v23, %v248_v22  ;;  %v246_v26 = vld [vmem:[%s224_s23 + $0x8] sm:$0xff]  ;;  %v449_v29 = vld [vmem:[%s233_s26] ss:$0 sm:$0xff] }
  0x16   : > { %476 = vmatpush3.bf16.msra.mxu0 %v270_v6  ;;  %v247_v27 = vpack.c.bf16 %v246_v26, %v245_v25 }
  0x17   : > { %477 = vmatprep.subr.bf16.mxu0 %v543_v0 }
  0x1a   : > { %478 = vmatpush3.bf16.msra.mxu0 %v269_v9 }
  0x1b   : > { %479 = vmatprep.subr.bf16.mxu0 %v543_v0 }
  0x1e   : > { %480 = vmatpush3.bf16.msra.mxu0 %v268_v12 }
  0x1f   : > { %481 = vmatprep.subr.bf16.mxu0 %v543_v0 }
  0x22   : > { %482 = vmatpush3.bf16.msra.mxu0 %v267_v15 }
  0x23   : > { %483 = vmatprep.subr.bf16.mxu0 %v543_v0 }
  0x26   : > { %484 = vmatpush3.bf16.msra.mxu0 %v266_v18 }
  0x27   : > { %485 = vmatprep.subr.bf16.mxu0 %v543_v0 }
  0x2a   : > { %486 = vmatpush3.bf16.msra.mxu0 %v265_v21 }
  0x2b   : > { %487 = vmatprep.subr.bf16.mxu0 %v543_v0 }
  0x2e   : > { %488 = vmatpush3.bf16.msra.mxu0 %v264_v24 }
  0x31   : > { %490 = vmatmul.mubr.bf16.vlgmr.msra.gmra.mxu0 %v247_v27 }
  0xf1   : > { %v313_v28 = vpop.f32.mrf.mxu0 }
  0xf2   : > { %v314_v32 = vadd.f32 %v449_v29, %v313_v28 }
  0xf3   : > { %v491_v30 = vpop.f32.mrf.mxu0 }
  0xf5   : > { %v316_v31 = vpop.f32.mrf.mxu0 }
  0xf6   : > { %v317_v33 = vadd.f32 %v449_v29, %v316_v31 }
  0xf7   : > { %v492_v34 = vpop.f32.mrf.mxu0 }
  0xf8   : > { %v462_v35 = vpack.c.bf16 %v317_v33, %v314_v32 }
  0xfa   : > { %463 = vst [vmem:[%s242_s30] sm:$0xff] %v462_v35  }
  0xfb PF: > { %s13_s14 = sadd.s32 1, %s541_s14   ;;  %s632_s12 = smov %s537_s13 }
  0xfc   : > { %p10_p5 = scmp.ge.s32.totalorder %s13_s14, 5   ;;  %s633_s13 = smov %s635_s15 }
  0xfe   :  { %12 = sbr.rel (!%p10_p5) target bundleno = 2 (0x2), region = 68 }

// kernel: multi_headed_attention.3
= control target key start
LH: loop header
LB: loop body
LE: loop exit
PB: predicated region body
PF: predicated region fallthrough
CT: control target
= control target key end

     0   :  { %11 = vsyncpa [#allocation3], 0  ;;  %s1755_s0 = inlined_call_operand.vmem [shape: bf16[2,8,128], index: 0, kind: input, shape index: {}]   ;;  %s1756_s1 = inlined_call_operand.vmem [shape: bf16[2,8,128], index: 1, kind: input, shape index: {}]   ;;  %s1757_s2 = inlined_call_operand.vmem [shape: bf16[2,8,128], index: 2, kind: input, shape index: {}]   ;;  %s1758_s3 = inlined_call_operand.vmem [shape: f32[2,8,8], index: 3, kind: input, shape index: {}]   ;;  %s1759_s4 = inlined_call_operand.vmem [shape: f32[128,128], index: 4, kind: input, shape index: {}]   ;;  %s1760_s5 = inlined_call_operand.vmem [shape: f32[1,128], index: 5, kind: input, shape index: {}]   ;;  %s1761_s6 = inlined_call_operand.hbm [shape: f32[2,8,128], index: 6, kind: output, shape index: {}]  }
   0x1   :  { %13 = vsyncpa [#allocation3 + $0x1], 0  ;;  %s1471_s21 = smov 0   ;;  %s1473_s22 = smov 0  }
   0x2   :  { %s1475_s23 = smov 0   ;;  %s1477_s24 = smov 0  }
   0x3   :  { %s1479_s25 = smov 0   ;;  %s1481_s26 = smov 0  }
   0x4 LB: > { %s1135_s27 = sadd.s32 4294967295, %s1428_s26   ;;  %s1136_s28 = sadd.s32 4294967294, %s1428_s26   ;;  %s1428_s26 = sphi %s1481_s26, %s19_s26   ;;  %s1424_s25 = sphi %s1479_s25, %s1768_s25   ;;  %s1420_s24 = sphi %s1477_s24, %s1767_s24   ;;  %s1416_s23 = sphi %s1475_s23, %s1766_s23   ;;  %s1412_s22 = sphi %s1473_s22, %s1765_s22   ;;  %s1408_s21 = sphi %s1471_s21, %s1764_s21  }
   0x5   : > { %s31_s29 = sadd.s32 1, %s1424_s25  ;;  %s190_s30 = sadd.s32 1, %s1416_s23 }
   0x6   : > { %p33_p0 = scmp.ge.s32.totalorder %s31_s29, 2  ;;  %p200_p1 = scmp.ne.s32.totalorder %s1416_s23, %s1412_s22 }
   0x7   : > { %p201_p2 = scmp.eq.s32.totalorder %s1135_s27, 1  ;;  %p206_p3 = scmp.ne.s32.totalorder %s1412_s22, %s1408_s21 }
   0x8   : > { %s1770_s29 = smov (%p33_p0, %s31_s29), 0  ;;  %p207_p5 = scmp.eq.s32.totalorder %s1136_s28, 1 }
   0x9   : > { %p1511_p4 = por %p201_p2, %p200_p1  ;;  %s185_s8 = ssub.s32 %s1424_s25, %s1770_s29 }
   0xa   : > { %p1139_p6 = scmp.ge.s32.totalorder %s1428_s26, 1  ;;  %p188_p7 = scmp.eq.s32.totalorder %s185_s8, 0 }
   0xb   : > { %p1518_p8 = por %p207_p5, %p206_p3  ;;  %p265_p9 = scmp.lt.s32.totalorder %s1428_s26, 3 }
   0xc   : > { %s1524_s10 = scalar_select %p188_p7, %s1416_s23, %s190_s30  }
   0xd   : > { %p266_p10 = pnand %p1139_p6, %p265_p9 }
   0xe   : > { %p312_p11 = scmp.lt.s32.totalorder (!%p266_p10), %s1420_s24, 1  ;;  %s1432_s30 = smov (!%p266_p10), 96  }
   0xf   : > { %269 = sbr.rel (%p266_p10) target bundleno = 2710 (0xa96), region = 44  ;;  %s1434_s16 = smov (!%p266_p10), 32  }
  0x14   : > { %v1430_v0 = vmov 0.0   ;;  %vm1431_vm0 = vmmov 0   ;;  %s313_s11 = scalar_select %p312_p11, %s1420_s24, 1  ;;  %vm341_vm1 = vcmask 261120   ;;  %vm391_vm2 = vcmask 64512   ;;  %v582_v51 = vld [vmem:[%s1759_s4 + $0x30] sm:$0xff] }
  0x15   : > { %1193 = vmatprep.subr.bf16.mxu0 %v1430_v0  ;;  %1195 = vmatprep.mubr.msk.bf16.mxu0 %vm1431_vm0, %v1430_v0  ;;  %vm407_vm3 = vcmask 1043456   ;;  %v583_v52 = vld [vmem:[%s1759_s4 + $0x38] sm:$0xff]  ;;  %v580_v53 = vld [vmem:[%s1759_s4 + $0x20] sm:$0xff]  ;;  %v581_v55 = vld [vmem:[%s1759_s4 + $0x28] sm:$0xff] }
  0x16   : > { %1199 = vmatprep.subr.bf16.mxu1 %v1430_v0  ;;  %1201 = vmatprep.mubr.msk.bf16.mxu1 %vm1431_vm0, %v1430_v0  ;;  %s1534_s12 = sshll.u32 %s313_s11, 2  ;;  %s1144_s19 = sshll.u32 %s313_s11, 3  ;;  %v586_v54 = vpack.c.bf16 %v583_v52, %v582_v51  ;;  %v585_v56 = vpack.c.bf16 %v581_v55, %v580_v53  ;;  %v453_v58 = vld [vmem:[%s1759_s4 + $0x10] sm:$0xff]  ;;  %v454_v59 = vld [vmem:[%s1759_s4 + $0x18] sm:$0xff] }
  0x17   : > { %s322_s15 = scalar_lea.vmem %s1756_s1, %s1534_s12  ;;  %s318_s18 = scalar_lea.vmem %s1755_s0, %s1534_s12  ;;  %v457_v62 = vpack.c.bf16 %v454_v59, %v453_v58 }
  0x18   : > { %v336_v1 = vld [vmem:[%s322_s15] sm:$0xf]  ;;  %s333_s28 = scalar_lea.vmem %s1758_s3, %s1144_s19  ;;  %s326_s13 = scalar_lea.vmem %s1757_s2, %s1534_s12 }
  0x19   : > { %v346_v2 = vsel %vm341_vm1, %v336_v1, 0  ;;  %v335_v3 = vld [vmem:[%s318_s18] sm:$0xf]  ;;  %v1560_v15 = vcombine.low %v336_v1, %v336_v1  ;;  %s1433_s19 = smov 64  }
  0x1a   : > { %1194 = vmatpush3.bf16.xpose.msra.mxu0 %v346_v2  ;;  %v1552_v4 = vld [vmem:[%s333_s28] sm:$0xff]  ;;  %v1564_v16 = vcombine.low %v335_v3, %v335_v3  ;;  %v452_v2 = vld [vmem:[%s1759_s4 + $0x8] sm:$0xff] }
  0x1b   : > { %1211 = vmatprep.subr.bf16.mxu0 %v1430_v0  ;;  %v339_v5 = vsub.f32 1.0, %v1552_v4  ;;  %466 = vrot.lane.b32.xlu1 %v1560_v15, %s1432_s30  ;;  %v337_v22 = vld [vmem:[%s326_s13] sm:$0xf] }
  0x1c   : > { %v409_v23 = vsel %vm407_vm3, %v337_v22, 0  ;;  %v1586_v43 = vcombine.low %v337_v22, %v337_v22  ;;  %v451_v1 = vld [vmem:[%s1759_s4] sm:$0xff] }
  0x1d   : > { %v1555_v8 = vmul.f32 -1e+09, %v339_v5  ;;  %1200 = vmatpush3.bf16.msra.mxu1 %v409_v23 }
  0x1e   : > { %1205 = vmatprep.subr.bf16.mxu1 %v1430_v0 }
  0x1f   : > { %461 = vrot.lane.b32.xlu1 %v1564_v16, %s1432_s30 }
  0x21   : > { %1196 = vmatmul.mubr.msk.bf16.vlgmr.msra.gmra.mxu0 %vm341_vm1, %v335_v3  ;;  %v456_v3 = vpack.c.bf16 %v452_v2, %v451_v1 }
  0x22   : > { %1213 = vmatprep.mubr.msk.bf16.mxu0 %vm1431_vm0, %v1430_v0 }
  0x8d   : > { %v467_v26 = vpop.permute.xlu1 %466 }
  0x8e   : > { %v472_v28 = vsel %vm341_vm1, %v467_v26, 0 }
  0x91   : > { %v462_v30 = vpop.permute.xlu1 %461 }
  0xe1   : > { %v382_v6 = vpop.f32.mrf.mxu0 }
  0xe2   : > { %v388_v7 = vmul.f32 0.17677669, %v382_v6 }
  0xe3   : > { %v1197_v9 = vpop.f32.mrf.mxu0 }
  0xe4   : > { %v389_v10 = vmul.f32 %v388_v7, %v1552_v4 }
  0xe5   : > { %v385_v11 = vpop.f32.mrf.mxu0 }
  0xe6   : > { %v390_v12 = vadd.f32 %v389_v10, %v1555_v8 }
  0xe7   : > { %v1198_v13 = vpop.f32.mrf.mxu0 }
  0xe8   : > { %v392_v14 = vsel %vm391_vm2, %v390_v12, -inf }
  0xe9   : > { %393 = vmax.xlane.f32.xlu0 %v392_v14 }
 0x172   : > { %v394_v17 = vpop.xlane.xlu0 %393 }
 0x173   : > { %v395_v18 = vsub.f32 %v390_v12, %v394_v17 }
 0x175   : > { %v396_v19 = vmul.f32 1.442695, %v395_v18 }
 0x177   : > { %1336 = vpow2.f32 %v396_v19 }
 0x184   : > { %v1337_v20 = vpop.eup %1336 }
 0x185   : > { %v398_v21 = vsel %vm391_vm2, %v1337_v20, 0.0 }
 0x186   : > { %399 = vadd.xlane.f32.xlu0 %v398_v21 }
 0x20f   : > { %v400_v24 = vpop.xlane.xlu0 %399 }
 0x210   : > { %1338 = vrcp.f32 %v400_v24 }
 0x21d   : > { %v1339_v25 = vpop.eup %1338 }
 0x21e   : > { %v402_v27 = vmul.f32 %v1339_v25, %v1337_v20 }
 0x220   : > { %v403_v29 = vpack.c.bf16 %v402_v27, %v402_v27 }
 0x222   : > { %1202 = vmatmul.mubr.msk.bf16.vlgmr.msra.gmra.mxu1 %vm391_vm2, %v403_v29 }
 0x223   : > { %1206 = vmatpush3.bf16.xpose.msra.mxu1 %v472_v28  ;;  %1207 = vmatprep.mubr.msk.bf16.mxu1 %vm1431_vm0, %v1430_v0 }
 0x224   : > { %1217 = vmatprep.subr.bf16.mxu1 %v1430_v0 }
 0x22a   : > { %1208 = vmatmul.mubr.msk.bf16.vlgmr.msra.gmra.mxu1 %vm341_vm1, %v462_v30 }
 0x22b   : > { %1221 = vmatprep.mubr.msk.bf16.mxu1 %vm1431_vm0, %v1430_v0  ;;  %1218 = vmatpush3.bf16.msra.mxu1 %v586_v54 }
 0x22c   : > { %1219 = vmatprep.subr.bf16.mxu1 %v1430_v0 }
 0x22f   : > { %1220 = vmatpush3.bf16.msra.mxu1 %v585_v56 }
 0x230   : > { %1233 = vmatprep.subr.bf16.mxu1 %v1430_v0 }
 0x2e2   : > { %v445_v31 = vpop.f32.mrf.mxu1 }
 0x2e3   : > { %v455_v5 = vpack.c.bf16 %v445_v31, %v445_v31 }
 0x2e4   : > { %v1203_v32 = vpop.f32.mrf.mxu1 }
 0x2e6   : > { %v448_v33 = vpop.f32.mrf.mxu1 }
 0x2e8   : > { %v1204_v34 = vpop.f32.mrf.mxu1 }
 0x2ea   : > { %v508_v35 = vpop.f32.mrf.mxu1 }
 0x2eb   : > { %v514_v36 = vmul.f32 0.17677669, %v508_v35 }
 0x2ec   : > { %v1209_v37 = vpop.f32.mrf.mxu1 }
 0x2ed   : > { %v515_v38 = vmul.f32 %v514_v36, %v1552_v4 }
 0x2ee   : > { %v511_v39 = vpop.f32.mrf.mxu1 }
 0x2ef   : > { %v516_v40 = vadd.f32 %v515_v38, %v1555_v8 }
 0x2f0   : > { %v1210_v41 = vpop.f32.mrf.mxu1 }
 0x2f1   : > { %v517_v42 = vsel %vm391_vm2, %v516_v40, -inf  ;;  %v789_v41 = vld [vmem:[%s1759_s4 + $0x58] sm:$0xff] }
 0x2f2   : > { %518 = vmax.xlane.f32.xlu0 %v517_v42 }
 0x308   : > { %532 = vrot.lane.b32.xlu0 %v1586_v43, %s1432_s30  ;;  %s1162_s30 = sshll.u32 %s1420_s24, 7 }
 0x309   : > { %s1709_s14 = scalar_lea.hbm %s1761_s6, %s1162_s30 }
 0x30c   : > { %675 = vrot.lane.b32.xlu0 %v1560_v15, %s1433_s19 }
 0x310   : > { %673 = vrot.lane.b32.xlu0 %v1564_v16, %s1433_s19 }
 0x37b   : > { %v519_v44 = vpop.xlane.xlu0 %518 }
 0x37c   : > { %v520_v45 = vsub.f32 %v516_v40, %v519_v44  ;;  %v788_v40 = vld [vmem:[%s1759_s4 + $0x50] sm:$0xff] }
 0x37d   : > { %v792_v42 = vpack.c.bf16 %v789_v41, %v788_v40 }
 0x37e   : > { %v521_v46 = vmul.f32 1.442695, %v520_v45 }
 0x37f   : > { %v533_v49 = vpop.permute.xlu0 %532 }
 0x380   : > { %1340 = vpow2.f32 %v521_v46  ;;  %v538_v50 = vsel %vm407_vm3, %v533_v49, 0  ;;  %v786_v49 = vld [vmem:[%s1759_s4 + $0x40] sm:$0xff] }
 0x381   : > { %1212 = vmatpush3.bf16.msra.mxu0 %v538_v50  ;;  %v787_v50 = vld [vmem:[%s1759_s4 + $0x48] sm:$0xff] }
 0x382   : > { %1225 = vmatprep.subr.bf16.mxu0 %v1430_v0  ;;  %v791_v51 = vpack.c.bf16 %v787_v50, %v786_v49 }
 0x383   : > { %v676_v6 = vpop.permute.xlu0 %675 }
 0x384   : > { %v681_v10 = vsel %vm341_vm1, %v676_v6, 0 }
 0x387   : > { %v674_v17 = vpop.permute.xlu0 %673 }
 0x38d   : > { %v1341_v47 = vpop.eup %1340 }
 0x38e   : > { %v523_v48 = vsel %vm391_vm2, %v1341_v47, 0.0 }
 0x38f   : > { %524 = vadd.xlane.f32.xlu1 %v523_v48 }
 0x3a0   : > { %738 = vrot.lane.b32.xlu1 %v1586_v43, %s1433_s19  ;;  %s309_s19 = sand.u32 1, %s1412_s22  }
 0x3a1   : > { %s1140_s20 = sshll.u32 %s309_s19, 3  ;;  %s1011_s15 = scalar_lea.sflag [#allocation3], %s309_s19 }
 0x3a2   : > { %s311_s8 = scalar_lea.vmem [#allocation2], %s1140_s20 }
 0x3a3   : > { %s1025_s11 = sshll.u32 %s311_s8, 4  ;;  %s1711_s11 = int_to_ptr.vmem [resolvable:$true] %s1025_s11 }
 0x3a4   : > { %s1352_s24 = scalar_lea.vmem %s1711_s11, 128 }
 0x3a5   : > { %p1353_p12 = scmp.ne.s32.totalorder %s1711_s11, %s1352_s24 }
 0x3a7   : > { %p1354_p13 = pnand %p1353_p12, %p1511_p4 }
 0x3a9   : > { %p1355_p0 = pneg %p1354_p13 }
 0x418   : > { %v525_v57 = vpop.xlane.xlu1 %524 }
 0x419   : > { %1342 = vrcp.f32 %v525_v57 }
 0x41c   : > { %v739_v33 = vpop.permute.xlu1 %738 }
 0x41d   : > { %v744_v34 = vsel %vm407_vm3, %v739_v33, 0 }
 0x426   : > { %v1343_v60 = vpop.eup %1342 }
 0x427   : > { %v527_v61 = vmul.f32 %v1343_v60, %v1341_v47 }
 0x429   : > { %v528_v63 = vpack.c.bf16 %v527_v61, %v527_v61 }
 0x42b   : > { %1214 = vmatmul.mubr.msk.bf16.vlgmr.msra.gmra.mxu0 %vm391_vm2, %v528_v63 }
 0x42c   : > { %1226 = vmatpush3.bf16.msra.mxu0 %v457_v62  ;;  %1229 = vmatprep.mubr.msk.bf16.mxu0 %vm1431_vm0, %v1430_v0 }
 0x42d   : > { %1227 = vmatprep.subr.bf16.mxu0 %v1430_v0 }
 0x430   : > { %1228 = vmatpush3.bf16.msra.mxu0 %v456_v3 }
 0x431   : > { %1239 = vmatprep.subr.bf16.mxu0 %v1430_v0 }
 0x433   : > { %1230 = vmatmul.mubr.msk.bf16.vlgmr.msra.gmra.mxu0 %vm341_vm1, %v455_v5 }
 0x434   : > { %1241 = vmatprep.mubr.msk.bf16.mxu0 %vm1431_vm0, %v1430_v0  ;;  %1240 = vmatpush3.bf16.msra.mxu0 %v744_v34 }
 0x435   : > { %1253 = vmatprep.subr.bf16.mxu0 %v1430_v0 }
 0x4eb   : > { %v574_v7 = vpop.f32.mrf.mxu0 }
 0x4ec   : > { %v584_v9 = vpack.c.bf16 %v574_v7, %v574_v7 }
 0x4ed   : > { %v1215_v11 = vpop.f32.mrf.mxu0 }
 0x4ee   : > { %1222 = vmatmul.mubr.msk.bf16.vlgmr.msra.gmra.mxu1 %vm341_vm1, %v584_v9 }
 0x4ef   : > { %1234 = vmatpush3.bf16.xpose.msra.mxu1 %v681_v10  ;;  %v577_v12 = vpop.f32.mrf.mxu0  ;;  %1235 = vmatprep.mubr.msk.bf16.mxu1 %vm1431_vm0, %v1430_v0 }
 0x4f0   : > { %1245 = vmatprep.subr.bf16.mxu1 %v1430_v0 }
 0x4f1   : > { %v1216_v13 = vpop.f32.mrf.mxu0 }
 0x4f3   : > { %v1635_v14 = vpop.f32.mrf.mxu0 }
 0x4f5   : > { %v1231_v18 = vpop.f32.mrf.mxu0 }
 0x4f6   : > { %1236 = vmatmul.mubr.msk.bf16.vlgmr.msra.gmra.mxu1 %vm341_vm1, %v674_v17  ;;  %v952_v17 = vld [vmem:[%s1759_s4 + $0x70] sm:$0xff]  ;;  %v953_v18 = vld [vmem:[%s1759_s4 + $0x78] sm:$0xff] }
 0x4f7   : > { %v670_v19 = vpop.f32.mrf.mxu0  ;;  %1249 = vmatprep.mubr.msk.bf16.mxu1 %vm1431_vm0, %v1430_v0  ;;  %1246 = vmatpush3.bf16.msra.mxu1 %v792_v42 }
 0x4f8   : > { %1247 = vmatprep.subr.bf16.mxu1 %v1430_v0  ;;  %v950_v19 = vld [vmem:[%s1759_s4 + $0x60] sm:$0xff] }
 0x4f9   : > { %v1232_v20 = vpop.f32.mrf.mxu0 }
 0x4fa   : > { %v956_v20 = vpack.c.bf16 %v953_v18, %v952_v17 }
 0x4fb   : > { %1248 = vmatpush3.bf16.msra.mxu1 %v791_v51 }
 0x4fc   : > { %1259 = vmatprep.subr.bf16.mxu1 %v1430_v0 }
 0x5ae   : > { %v1640_v21 = vpop.f32.mrf.mxu1 }
 0x5b0   : > { %v1223_v22 = vpop.f32.mrf.mxu1 }
 0x5b2   : > { %v627_v23 = vpop.f32.mrf.mxu1 }
 0x5b4   : > { %v1224_v24 = vpop.f32.mrf.mxu1 }
 0x5b6   : > { %v717_v25 = vpop.f32.mrf.mxu1 }
 0x5b7   : > { %v723_v26 = vmul.f32 0.17677669, %v717_v25 }
 0x5b8   : > { %v1237_v27 = vpop.f32.mrf.mxu1 }
 0x5b9   : > { %v724_v28 = vmul.f32 %v723_v26, %v1552_v4 }
 0x5ba   : > { %v720_v29 = vpop.f32.mrf.mxu1 }
 0x5bb   : > { %v725_v30 = vadd.f32 %v724_v28, %v1555_v8 }
 0x5bc   : > { %v1238_v31 = vpop.f32.mrf.mxu1 }
 0x5bd   : > { %v726_v32 = vsel %vm391_vm2, %v725_v30, -inf }
 0x5be   : > { %727 = vmax.xlane.f32.xlu0 %v726_v32 }
 0x647   : > { %v728_v35 = vpop.xlane.xlu0 %727 }
 0x648   : > { %v729_v36 = vsub.f32 %v725_v30, %v728_v35 }
 0x64a   : > { %v730_v37 = vmul.f32 1.442695, %v729_v36 }
 0x64c   : > { %1344 = vpow2.f32 %v730_v37 }
 0x659   : > { %v1345_v38 = vpop.eup %1344 }
 0x65a   : > { %v732_v39 = vsel %vm391_vm2, %v1345_v38, 0.0 }
 0x65b   : > { %733 = vadd.xlane.f32.xlu1 %v732_v39 }
 0x66c   : > { %839 = vrot.lane.b32.xlu1 %v1560_v15, %s1434_s16 }
 0x670   : > { %837 = vrot.lane.b32.xlu1 %v1564_v16, %s1434_s16 }
 0x6e4   : > { %v734_v44 = vpop.xlane.xlu1 %733 }
 0x6e5   : > { %1346 = vrcp.f32 %v734_v44 }
 0x6e8   : > { %v840_v46 = vpop.permute.xlu1 %839 }
 0x6e9   : > { %v845_v47 = vsel %vm341_vm1, %v840_v46, 0 }
 0x6ec   : > { %v838_v48 = vpop.permute.xlu1 %837 }
 0x6f2   : > { %v1347_v45 = vpop.eup %1346 }
 0x6f3   : > { %v736_v15 = vmul.f32 %v1347_v45, %v1345_v38 }
 0x6f5   : > { %v737_v16 = vpack.c.bf16 %v736_v15, %v736_v15 }
 0x6f7   : > { %1242 = vmatmul.mubr.msk.bf16.vlgmr.msra.gmra.mxu0 %vm391_vm2, %v737_v16 }
 0x6f8   : > { %1254 = vmatpush3.bf16.xpose.msra.mxu0 %v845_v47  ;;  %1255 = vmatprep.mubr.msk.bf16.mxu0 %vm1431_vm0, %v1430_v0 }
 0x6f9   : > { %1265 = vmatprep.subr.bf16.mxu0 %v1430_v0 }
 0x6ff   : > { %1256 = vmatmul.mubr.msk.bf16.vlgmr.msra.gmra.mxu0 %vm341_vm1, %v838_v48 }
 0x700   : > { %1269 = vmatprep.mubr.msk.bf16.mxu0 %vm1431_vm0, %v1430_v0  ;;  %1266 = vmatpush3.bf16.msra.mxu0 %v956_v20 }
 0x701   : > { %1267 = vmatprep.subr.bf16.mxu0 %v1430_v0 }
 0x7b7   : > { %v780_v52 = vpop.f32.mrf.mxu0 }
 0x7b8   : > { %v790_v53 = vpack.c.bf16 %v780_v52, %v780_v52 }
 0x7b9   : > { %v1243_v54 = vpop.f32.mrf.mxu0 }
 0x7ba   : > { %1250 = vmatmul.mubr.msk.bf16.vlgmr.msra.gmra.mxu1 %vm341_vm1, %v790_v53 }
 0x7bb   : > { %v783_v55 = vpop.f32.mrf.mxu0  ;;  %1261 = vmatprep.mubr.msk.bf16.mxu1 %vm1431_vm0, %v1430_v0  ;;  %v1160_v0 = vld [vmem:[%s1760_s5] ss:$0 sm:$0xff] }
 0x7bd   : > { %v1244_v56 = vpop.f32.mrf.mxu0 }
 0x7bf   : > { %v881_v57 = vpop.f32.mrf.mxu0 }
 0x7c0   : > { %v887_v58 = vmul.f32 0.17677669, %v881_v57 }
 0x7c1   : > { %v1257_v59 = vpop.f32.mrf.mxu0 }
 0x7c2   : > { %v888_v60 = vmul.f32 %v887_v58, %v1552_v4 }
 0x7c3   : > { %v884_v61 = vpop.f32.mrf.mxu0 }
 0x7c4   : > { %v889_v62 = vadd.f32 %v888_v60, %v1555_v8  ;;  %v668_v8 = vadd.f32 %v1635_v14, %v1640_v21  ;;  %v951_v14 = vld [vmem:[%s1759_s4 + $0x68] sm:$0xff] }
 0x7c5   : > { %v1258_v63 = vpop.f32.mrf.mxu0  ;;  %v955_v21 = vpack.c.bf16 %v951_v14, %v950_v19 }
 0x7c6   : > { %v890_v1 = vsel %vm391_vm2, %v889_v62, -inf }
 0x7c7   : > { %891 = vmax.xlane.f32.xlu0 %v890_v1  ;;  %1268 = vmatpush3.bf16.msra.mxu0 %v955_v21 }
 0x7dd   : > { %902 = vrot.lane.b32.xlu0 %v1586_v43, %s1434_s16  ;;  %s1435_s16 = smov [#allocation2]  }
 0x7de   : > { %s1356_s17 = sshll.u32 %s1435_s16, 4  ;;  %s1357_s17 = int_to_ptr.vmem [resolvable:$false] %s1356_s17 }
 0x7df   : > { %s1358_s18 = scalar_lea.vmem %s1357_s17, 256  ;;  %p1359_p1 = scmp.lt.s32.totalorder %s1711_s11, %s1357_s17 }
 0x7e0   : > { %p1360_p2 = scmp.lt.s32.totalorder %s1358_s18, %s1352_s24 }
 0x7e2   : > { %p1361_p3 = por %p1360_p2, %p1359_p1 }
 0x7e4   : > { %p1362_p5 = pnand %p1361_p3, %p1355_p0 }
 0x850   : > { %v892_v2 = vpop.xlane.xlu0 %891 }
 0x851   : > { %v893_v3 = vsub.f32 %v889_v62, %v892_v2 }
 0x853   : > { %v894_v5 = vmul.f32 1.442695, %v893_v3 }
 0x854   : > { %v903_v9 = vpop.permute.xlu0 %902 }
 0x855   : > { %1348 = vpow2.f32 %v894_v5  ;;  %v908_v4 = vsel %vm407_vm3, %v903_v9, 0 }
 0x856   : > { %1260 = vmatpush3.bf16.msra.mxu1 %v908_v4 }
 0x862   : > { %v1349_v6 = vpop.eup %1348 }
 0x863   : > { %v896_v7 = vsel %vm391_vm2, %v1349_v6, 0.0 }
 0x864   : > { %897 = vadd.xlane.f32.xlu1 %v896_v7 }
 0x87a   : > { %v830_v10 = vpop.f32.mrf.mxu1 }
 0x87b   : > { %v836_v11 = vadd.f32 %v830_v10, %v668_v8 }
 0x87c   : > { %v1251_v12 = vpop.f32.mrf.mxu1 }
 0x87e   : > { %v833_v13 = vpop.f32.mrf.mxu1 }
 0x880   : > { %v1252_v43 = vpop.f32.mrf.mxu1 }
 0x8ed   : > { %v898_v22 = vpop.xlane.xlu1 %897 }
 0x8ee   : > { %1350 = vrcp.f32 %v898_v22 }
 0x8fb   : > { %v1351_v23 = vpop.eup %1350 }
 0x8fc   : > { %v900_v24 = vmul.f32 %v1351_v23, %v1349_v6 }
 0x8fe   : > { %v901_v25 = vpack.c.bf16 %v900_v24, %v900_v24 }
 0x900   : > { %1262 = vmatmul.mubr.msk.bf16.vlgmr.msra.gmra.mxu1 %vm391_vm2, %v901_v25 }
 0x9c0   : > { %v944_v26 = vpop.f32.mrf.mxu1 }
 0x9c1   : > { %v954_v27 = vpack.c.bf16 %v944_v26, %v944_v26 }
 0x9c2   : > { %v1263_v28 = vpop.f32.mrf.mxu1 }
 0x9c3   : > { %1270 = vmatmul.mubr.msk.bf16.vlgmr.msra.gmra.mxu0 %vm341_vm1, %v954_v27 }
 0x9c4   : > { %v947_v29 = vpop.f32.mrf.mxu1 }
 0x9c6   : > { %v1264_v30 = vpop.f32.mrf.mxu1 }
 0xa83   : > { %v994_v31 = vpop.f32.mrf.mxu0 }
 0xa84   : > { %v1000_v32 = vadd.f32 %v994_v31, %v836_v11 }
 0xa85   : > { %v1271_v33 = vpop.f32.mrf.mxu0 }
 0xa86   : > { %v1008_v34 = vadd.f32 %v1160_v0, %v1000_v32 }
 0xa87   : > { %v997_v35 = vpop.f32.mrf.mxu0 }
 0xa88   : > { %1009 = vst [vmem:[%s311_s8] sm:$0xff] %v1008_v34 }
 0xa89   : > { %v1272_v36 = vpop.f32.mrf.mxu0 }
 0xa8a   : > { %1365 = shalt.err (!%p1362_p5)
}
 0xa8b   : > { %s1366_s20 = scalar_lea.hbm %s1709_s14, 128  ;;  %s1370_s28 = scalar_lea.hbm %s1761_s6, 256 }
 0xa8c   : > { %p1367_p6 = scmp.ne.s32.totalorder %s1709_s14, %s1366_s20  ;;  %p1371_p10 = scmp.lt.s32.totalorder %s1709_s14, %s1761_s6 }
 0xa8d   : > { %p1372_p11 = scmp.lt.s32.totalorder %s1370_s28, %s1366_s20 }
 0xa8e   : > { %p1368_p7 = pnand %p1367_p6, %p1511_p4 }
 0xa8f   : > { %p1373_p12 = por %p1372_p11, %p1371_p10 }
 0xa90   : > { %p1369_p9 = pneg %p1368_p7 }
 0xa92   : > { %p1374_p13 = pnand %p1373_p12, %p1369_p9 }
 0xa94   : > { %1377 = shalt.err (!%p1374_p13)
}
 0xa95   : > { %1273 = dma.vmem_to_hbm [thread:$0]  (%p1511_p4), %s1711_s11, 128, %s1709_s14, %s1011_s15  }
 0xa96 PF: > { %p1279_p0 = scmp.ge.s32.totalorder %s1428_s26, 2  ;;  %s1037_s13 = sand.u32 1, %s1408_s21  }
 0xa97   : > { %s1038_s12 = scalar_lea.sflag [#allocation3], %s1037_s13 }
 0xa98   : > { %p1276_p1 = pnand %p1279_p0, %p1518_p8 }
 0xa9a   : > { %p1277_p2 = pneg %p1276_p1 }
 0xa9c   : > { %1403 = dma.done.wait (%p1277_p2), %s1038_s12, 128  }
 0xa9d   : > { %1405 = vsyncadd (%p1277_p2), %s1038_s12, 4294967168  ;;  %s19_s26 = sadd.s32 1, %s1428_s26   ;;  %s1764_s21 = smov %s1412_s22 }
 0xa9e   : > { %p16_p3 = scmp.ge.s32.totalorder %s19_s26, 4   ;;  %s1765_s22 = smov %s1416_s23 }
 0xa9f   : > { %s1766_s23 = smov %s1524_s10  ;;  %s1767_s24 = smov %s1424_s25 }
 0xaa0   : > { %s1768_s25 = smov %s1770_s29  ;;  %18 = sbr.rel (!%p16_p3) target bundleno = 4 (0x4), region = 88 }
 0xaa5   :  { %1043 = vsyncpa [#allocation3], 1 }
 0xaa6   :  { %1045 = vsyncpa [#allocation3 + $0x1], 1 }

</bundles_post_ra>
